<compile_context>
chip_gen: v5e
topology: v5e:2x2
jax: 0.10.0
libtpu: 0.0.40
codegen_flags: <defaults>
</compile_context>

<pallas_src>
import jax
import jax.numpy as jnp
from jax.experimental import pallas as pl
from jax.experimental.pallas import tpu as pltpu


def _round_up(a: int, b: int) -> int:
    return ((a + b - 1) // b) * b


def _chomp_kernel(x_ref, o_ref):
    # x_ref: (TM, in_cols) VMEM tile, o_ref: (TM, out_cols) VMEM tile with
    # in_cols >= out_cols.  Pure copy; the slice starts at column 0 so there
    # is no lane shift.
    out_cols = o_ref.shape[-1]
    if x_ref.shape[-1] == out_cols:
        o_ref[...] = x_ref[...]
    else:
        o_ref[...] = x_ref[:, :out_cols]


def chomp1d(x: jax.Array, chomp_size: int, *, force_pallas: bool = False) -> jax.Array:
    """Pallas equivalent of Chomp1d(chomp_size)(x) for x of shape (N, C, L).

    NOTE: if the consumer of this output is another Pallas kernel / conv, the
    cheapest implementation is to fold the chomp into that consumer's
    BlockSpec index_map (or just use x[:, :, :-chomp_size] and let XLA fuse
    the slice); that removes 100% of this kernel's HBM traffic.
    """
    N, C, L = x.shape
    assert 0 <= chomp_size < L, "chomp_size must be in [0, L)"
    if chomp_size == 0:
        # Chomp1d is only meaningful for chomp_size > 0; treat 0 as identity.
        return x

    L_out = L - chomp_size
    NC = N * C
    itemsize = jnp.dtype(x.dtype).itemsize

    # Tiny problems: every store would be a masked vst on a mostly-empty vreg
    # and every DMA row is tiny; XLA's slice copy is at least as good.
    if not force_pallas and (L_out < 256 or NC * L_out * itemsize < 64 * 1024):
        return x[:, :, :L_out]

    # Sublane packing: f32 -> 8 rows/vreg, bf16 -> 16, int8/fp8 -> 32.
    sub = 8 * max(1, 4 // itemsize)

    # Per-chip VMEM budget for the double-buffered in+out tile footprint.
    # (v5e/v6e: 128 MiB physical -> 28 MiB budget; v7x: 64 MiB -> 16 MiB.)
    try:
        phys_vmem = int(pltpu.get_tpu_info().vmem_capacity_bytes)
    except Exception:
        phys_vmem = 64 * 1024 * 1024  # conservative (v7x-sized) fallback
    vmem_budget = min(max(phys_vmem // 4, 12 * 1024 * 1024), 28 * 1024 * 1024)

    # Input width when a row block holds a single column block.  Prefer a
    # contiguous full-L read (one slab DMA per block) unless the chomped tail
    # is large enough that skipping it is worth strided row reads.
    trunc_cols = min(_round_up(L_out, 128), L)
    tail_bytes = (L - trunc_cols) * itemsize
    in_cols = L if tail_bytes <= max(512, (L * itemsize) // 8) else trunc_cols

    # Lane/sublane-PADDED bytes per row of the (in + out) tiles.
    bpr_pad = (_round_up(in_cols, 128) + _round_up(L_out, 128)) * itemsize
    tm_cap = (vmem_budget // (2 * bpr_pad)) // sub * sub  # 2x: double buffering

    if tm_cap >= sub:
        # ---- Row-only tiling: one column block per row block. ----
        if NC <= sub:
            TM = NC  # full row dim (allowed even if not a multiple of sub)
        else:
            # Aim for ~8 grid steps, but never shrink blocks below ~1 MiB of
            # output (per-step overhead ~0.35us) and always allow >=2 steps
            # so v7x can split the "parallel" axis across both TCs.
            min_rows_by_bytes = _round_up(
                pl.cdiv(1 << 20, max(1, L_out * itemsize)), sub)
            tm_pref = max(_round_up(pl.cdiv(NC, 8), sub), min_rows_by_bytes)
            two_step_cap = _round_up(pl.cdiv(NC, 2), sub)
            TM = min(tm_cap, two_step_cap, max(sub, tm_pref))
        grid_rows = pl.cdiv(NC, TM)
        grid_cols = 1
        in_block, out_block = (TM, in_cols), (TM, L_out)
        in_map = lambda i, j: (i, 0)
        out_map = lambda i, j: (i, 0)
    else:
        # ---- Very long rows: tile columns too (lane-dense blocks). ----
        TM = NC if NC <= sub else sub
        tm_pad = _round_up(TM, sub)
        tl_cap = vmem_budget // (2 * 2 * tm_pad * itemsize) // 128 * 128
        TL = max(128, min(tl_cap, _round_up(L_out, 128)))
        grid_rows = pl.cdiv(NC, TM)
        grid_cols = pl.cdiv(L_out, TL)
        in_block, out_block = (TM, TL), (TM, TL)
        in_map = lambda i, j: (i, j)
        out_map = lambda i, j: (i, j)

    # Padded, double-buffered VMEM footprint -> explicit vmem limit + headroom.
    tm_pad = _round_up(TM, sub)
    footprint = 2 * tm_pad * (
        _round_up(in_block[1], 128) + _round_up(out_block[1], 128)) * itemsize
    vmem_limit = int(min(max(2 * footprint, 16 * 1024 * 1024), 60 * 1024 * 1024))

    x2 = x.reshape(NC, L)  # free, contiguous major-dim reshape

    read_cols = in_block[1] if grid_cols == 1 else min(grid_cols * in_block[1], L)
    bytes_accessed = (NC * read_cols + NC * L_out) * itemsize

    out2 = pl.pallas_call(
        _chomp_kernel,
        out_shape=jax.ShapeDtypeStruct((NC, L_out), x.dtype),
        grid=(grid_rows, grid_cols),
        in_specs=[pl.BlockSpec(in_block, in_map)],
        out_specs=pl.BlockSpec(out_block, out_map),
        compiler_params=pltpu.CompilerParams(
            dimension_semantics=("parallel", "parallel"),
            vmem_limit_bytes=vmem_limit,
        ),
        cost_estimate=pl.CostEstimate(
            flops=0, transcendentals=0, bytes_accessed=bytes_accessed),
    )(x2)

    return out2.reshape(N, C, L_out)


if __name__ == "__main__":
    key = jax.random.PRNGKey(0)
    k1, k2, k3 = jax.random.split(key, 3)

    def check(x, chomp, **kw):
        out = jax.block_until_ready(chomp1d(x, chomp, **kw))
        ref = x[:, :, : x.shape[-1] - chomp]
        assert out.shape == ref.shape, (out.shape, ref.shape)
        assert out.dtype == x.dtype
        assert jnp.array_equal(out, ref), "mismatch vs reference slice"

    # 1) Tiny shape matching the module's typical use (XLA-slice short-circuit).
    x1 = jax.random.normal(k1, (2, 4, 16), dtype=jnp.float32)
    check(x1, 3)

    # 2) Same tiny shape, forced through the Pallas kernel.
    check(x1, 3, force_pallas=True)

    # 3) f32, multi-row-block grid (contiguous full-L reads, 2+ grid steps).
    x3 = jax.random.normal(k2, (2, 32, 640), dtype=jnp.float32)
    check(x3, 5)

    # 4) bf16 path (different sublane packing), natural Pallas path.
    x4 = jax.random.normal(k3, (4, 32, 512), dtype=jnp.bfloat16)
    check(x4, 9)

    print("KERNEL_OK")
</pallas_src>

<mosaic_0001>
module attributes {stable_mosaic.version = 11 : i64} {
  func.func @_chomp_kernel(%arg0: i32, %arg1: i32, %arg2: memref<8x16xf32, #tpu.memory_space<vmem>>, %arg3: memref<8x13xf32, #tpu.memory_space<vmem>>) attributes {dimension_semantics = [#tpu.dimension_semantics<parallel>, #tpu.dimension_semantics<parallel>], iteration_bounds = array<i64: 1, 1>, scalar_prefetch = 0 : i64, scratch_operands = 0 : i64, tpu.core_type = #tpu.core_type<tc>, window_params = [{transform_indices = @transform_0, window_bounds = array<i64: 8, 16>}, {transform_indices = @transform_1, window_bounds = array<i64: 8, 13>}]} {
    %c0 = arith.constant 0 : index
    %c0_0 = arith.constant 0 : index
    %0 = vector.load %arg2[%c0, %c0_0] : memref<8x16xf32, #tpu.memory_space<vmem>>, vector<8x13xf32>
    %c0_1 = arith.constant 0 : index
    %c0_2 = arith.constant 0 : index
    %1 = vector.load %arg3[%c0_1, %c0_2] : memref<8x13xf32, #tpu.memory_space<vmem>>, vector<8x13xf32>
    tpu.vector_store %arg3[%c0_1, %c0_2], %0 {strides = array<i32>} : memref<8x13xf32, #tpu.memory_space<vmem>>, vector<8x13xf32>,
    return
  }
  func.func @transform_0(%arg0: i32, %arg1: i32) -> (i32, i32) {
    %c0_i32 = arith.constant 0 : i32
    %c0_i32_0 = arith.constant 0 : i32
    return %arg0, %c0_i32 : i32, i32
  }
  func.func @transform_1(%arg0: i32, %arg1: i32) -> (i32, i32) {
    %c0_i32 = arith.constant 0 : i32
    %c0_i32_0 = arith.constant 0 : i32
    return %arg0, %c0_i32 : i32, i32
  }
}

</mosaic_0001>

<bundles_post_ra>
// kernel: tpu_custom_call.1
= control target key start
LH: loop header
LB: loop body
LE: loop exit
PB: predicated region body
PF: predicated region fallthrough
CT: control target
= control target key end

     0   :  { %6 = vsyncpa [#allocation3], 0  ;;  %s115_s0 = inlined_call_operand.hbm [shape: f32[8,16], index: 0, kind: input, shape index: {}]   ;;  %s116_s1 = inlined_call_operand.hbm [shape: f32[8,13], index: 1, kind: output, shape index: {}]  }
   0x1   :  { %7 = vsyncpa [#allocation4], 0  ;;  %s13_s8 = sshll.u32 %s115_s0, 4  ;;  %s97_s9 = smov [#allocation2]   ;;  %s14_s8 = int_to_ptr.hbm [resolvable:$true] %s13_s8 }
   0x2   :  { %s15_s10 = sshll.u32 %s97_s9, 4  ;;  %s16_s10 = int_to_ptr.vmem [resolvable:$true] %s15_s10 }
   0x3   :  { %18 = dma.hbm_to_vmem [thread:$0]  %s14_s8, 128, %s16_s10, [#allocation3]  }
   0x4   :  { %93 = dma.done.wait [#allocation3], 128  }
   0x5   :  { %94 = vsyncadd [#allocation3], 4294967168  ;;  %s98_s11 = smov [#allocation5]   ;;  %s33_s15 = sshll.u32 %s116_s1, 4  ;;  %vm24_vm0 = vcmask 105472   ;;  %v23_v0 = vld [vmem:[#allocation2] sm:$0xff]  ;;  %s34_s15 = int_to_ptr.hbm [resolvable:$true] %s33_s15 }
   0x6   :  { %s31_s12 = sshll.u32 %s98_s11, 4  ;;  %25 = vst.msk [vmem:[#allocation5] sm:$0xff] %vm24_vm0, %v23_v0  ;;  %s32_s12 = int_to_ptr.vmem [resolvable:$true] %s31_s12 }
   0x7   :  { %36 = dma.vmem_to_hbm [thread:$0]  %s32_s12, 128, %s34_s15, [#allocation4]  }
   0x8   :  { %95 = dma.done.wait [#allocation4], 128  }
   0x9   :  { %96 = vsyncadd [#allocation4], 4294967168 }
   0xa   :  { %41 = vsyncpa [#allocation3], 1 }
   0xb   :  { %42 = vsyncpa [#allocation4], 1 }

</bundles_post_ra>
